<compile_context>
chip_gen: v6e
topology: v6e:2x2x1
jax: 0.10.0
libtpu: 0.0.40
codegen_flags: <defaults>
</compile_context>

<pallas_src>
import functools

import jax
import jax.numpy as jnp
from jax.experimental import pallas as pl
from jax.experimental.pallas import tpu as pltpu


# ----------------------------------------------------------------------------
# Single fused kernel: one grid step == one batch item.
# ----------------------------------------------------------------------------
def _cpm_kernel(xyz_ref,
                w1_ref, b1_ref, w2_ref, b2_ref, w3_ref, b3_ref, w4_ref, b4_ref,
                cw1a_ref, cw1b_ref, cb1_ref, cw2_ref, cb2_ref, cw3_ref, cb3_ref,
                gsum_ref, pmf_ref):
    x = xyz_ref[0]                                                   # (S, 3)

    # ---- PointNet stand-in: shared per-point MLP [3->64->64->128->128] ----
    h = jnp.dot(x, w1_ref[...], preferred_element_type=jnp.float32) + b1_ref[...]
    h = jnp.maximum(h, 0.0)
    h = jnp.dot(h, w2_ref[...], preferred_element_type=jnp.float32) + b2_ref[...]
    h = jnp.maximum(h, 0.0)
    h = jnp.dot(h, w3_ref[...], preferred_element_type=jnp.float32) + b3_ref[...]
    h = jnp.maximum(h, 0.0)
    h = jnp.dot(h, w4_ref[...], preferred_element_type=jnp.float32) + b4_ref[...]
    h = jnp.maximum(h, 0.0)
    g = jnp.max(h, axis=0, keepdims=True)                            # (1, 128) global feature

    # ---- model_mlp conv1 (131 -> 256):  cat((xyz, g)) @ W == x@Wa + g@Wb ----
    y = jnp.dot(x, cw1a_ref[...], preferred_element_type=jnp.float32)        # (S, 256)
    y = y + jnp.dot(g, cw1b_ref[...], preferred_element_type=jnp.float32)    # + (1, 256) bcast
    y = jnp.maximum(y + cb1_ref[...], 0.0)
    # ---- conv2 (256 -> 256) + ReLU ----
    y = jnp.dot(y, cw2_ref[...], preferred_element_type=jnp.float32) + cb2_ref[...]
    y = jnp.maximum(y, 0.0)
    # ---- conv3 (256 -> d*L), no activation ----
    y = jnp.dot(y, cw3_ref[...], preferred_element_type=jnp.float32) + cb3_ref[...]  # (S, d*L)

    # ---- softmax over each group of L contiguous channels (== softmax(dim=3)) ----
    # Per-row max is constant within every group, so subtracting it leaves the
    # per-group softmax unchanged while giving numerical stability.
    m = jnp.max(y, axis=-1, keepdims=True)                           # (S, 1)
    e = jnp.exp(y - m)                                               # (S, d*L)  (EUP)
    denom = jnp.dot(e, gsum_ref[...], preferred_element_type=jnp.float32)  # per-group sums, lane-dense
    pmf_ref[0] = e / denom


# ----------------------------------------------------------------------------
# Parameter init (shapes follow the PyTorch module __init__)
# ----------------------------------------------------------------------------
def init_params(key, *, d, L):
    DL = d * L
    keys = iter(jax.random.split(key, 32))

    def lin(cin, cout):
        kw, kb = jax.random.split(next(keys))
        w = jax.random.normal(kw, (cin, cout), jnp.float32) / jnp.sqrt(float(cin))
        b = 0.01 * jax.random.normal(kb, (1, cout), jnp.float32)
        return w, b

    p = {}
    # PointNet shared MLP (norm=False, res=False): 3 -> 64 -> 64 -> 128 -> 128
    p["pn_w1"], p["pn_b1"] = lin(3, 64)
    p["pn_w2"], p["pn_b2"] = lin(64, 64)
    p["pn_w3"], p["pn_b3"] = lin(64, 128)
    p["pn_w4"], p["pn_b4"] = lin(128, 128)
    # model_mlp: Conv2d(3+128,256,1) ReLU, Conv2d(256,256,1) ReLU, Conv2d(256,d*L,1)
    # First conv weight stored split: rows [0:3] act on xyz, rows [3:131] on the
    # repeated global feature (equivalent to the single 131x256 matrix).
    p["cw1a"], _ = lin(3, 256)
    p["cw1b"], p["cb1"] = lin(128, 256)
    p["cw2"], p["cb2"] = lin(256, 256)
    p["cw3"], p["cb3"] = lin(256, DL)
    # Block-diagonal group-sum matrix for the softmax denominator:
    # gsum[c, c'] = 1 if c // L == c' // L else 0    (shape (d*L, d*L))
    ch = jnp.arange(DL)
    p["gsum"] = (ch[:, None] // L == ch[None, :] // L).astype(jnp.float32)
    return p


# ----------------------------------------------------------------------------
# Forward wrapper: one pallas_call for the whole module.
# ----------------------------------------------------------------------------
@functools.partial(jax.jit, static_argnames=("d", "L"))
def conditional_probability_model(params, sampled_xyz, *, d, L):
    B, S, _ = sampled_xyz.shape
    DL = d * L

    operands = [
        params["pn_w1"], params["pn_b1"], params["pn_w2"], params["pn_b2"],
        params["pn_w3"], params["pn_b3"], params["pn_w4"], params["pn_b4"],
        params["cw1a"], params["cw1b"], params["cb1"],
        params["cw2"], params["cb2"], params["cw3"], params["cb3"],
        params["gsum"],
    ]

    def const_spec(arr):
        return pl.BlockSpec(arr.shape, lambda b: (0,) * arr.ndim)

    in_specs = [pl.BlockSpec((1, S, 3), lambda b: (b, 0, 0))]
    in_specs += [const_spec(a) for a in operands]

    pmf_flat = pl.pallas_call(
        _cpm_kernel,
        out_shape=jax.ShapeDtypeStruct((B, S, DL), jnp.float32),
        grid=(B,),
        in_specs=in_specs,
        out_specs=pl.BlockSpec((1, S, DL), lambda b: (b, 0, 0)),
        compiler_params=pltpu.CompilerParams(
            dimension_semantics=("parallel",),      # batch across v7x's 2 TCs
            vmem_limit_bytes=32 * 1024 * 1024,       # explicit; survives v7x's 64 MiB VMEM
        ),
    )(sampled_xyz, *operands)

    # Lane-dense store from the kernel; free reshape matches
    # torch: output.transpose(1, 2).view(B, S, d, L)
    return pmf_flat.reshape(B, S, d, L)


# ----------------------------------------------------------------------------
if __name__ == "__main__":
    d, L = 16, 8          # d*L = 128 output channels (lane-dense)
    B, S = 2, 16          # small point cloud: (B, S, 3)

    key = jax.random.PRNGKey(0)
    kp, kx = jax.random.split(key)
    params = init_params(kp, d=d, L=L)
    sampled_xyz = jax.random.normal(kx, (B, S, 3), jnp.float32)

    pmf = conditional_probability_model(params, sampled_xyz, d=d, L=L)
    jax.block_until_ready(pmf)

    assert pmf.shape == (B, S, d, L), pmf.shape
    assert bool(jnp.all(jnp.isfinite(pmf)))
    assert bool(jnp.all(pmf >= 0.0))
    row_sums = jnp.sum(pmf, axis=-1)
    assert bool(jnp.all(jnp.abs(row_sums - 1.0) < 1e-4)), "softmax rows must sum to 1"
    print("KERNEL_OK")
</pallas_src>

<mosaic_0001>
module attributes {stable_mosaic.version = 11 : i64} {
  func.func @_cpm_kernel(%arg0: i32, %arg1: memref<1x16x3xf32, #tpu.memory_space<vmem>>, %arg2: memref<3x64xf32, #tpu.memory_space<vmem>>, %arg3: memref<1x64xf32, #tpu.memory_space<vmem>>, %arg4: memref<64x64xf32, #tpu.memory_space<vmem>>, %arg5: memref<1x64xf32, #tpu.memory_space<vmem>>, %arg6: memref<64x128xf32, #tpu.memory_space<vmem>>, %arg7: memref<1x128xf32, #tpu.memory_space<vmem>>, %arg8: memref<128x128xf32, #tpu.memory_space<vmem>>, %arg9: memref<1x128xf32, #tpu.memory_space<vmem>>, %arg10: memref<3x256xf32, #tpu.memory_space<vmem>>, %arg11: memref<128x256xf32, #tpu.memory_space<vmem>>, %arg12: memref<1x256xf32, #tpu.memory_space<vmem>>, %arg13: memref<256x256xf32, #tpu.memory_space<vmem>>, %arg14: memref<1x256xf32, #tpu.memory_space<vmem>>, %arg15: memref<256x128xf32, #tpu.memory_space<vmem>>, %arg16: memref<1x128xf32, #tpu.memory_space<vmem>>, %arg17: memref<128x128xf32, #tpu.memory_space<vmem>>, %arg18: memref<1x16x128xf32, #tpu.memory_space<vmem>>) attributes {dimension_semantics = [#tpu.dimension_semantics<parallel>], iteration_bounds = array<i64: 2>, scalar_prefetch = 0 : i64, scratch_operands = 0 : i64, tpu.core_type = #tpu.core_type<tc>, window_params = [{transform_indices = @transform_0, window_bounds = array<i64: 1, 16, 3>}, {pipeline_mode = #tpu.pipeline_mode<synchronous>, transform_indices = @transform_1, window_bounds = array<i64: 3, 64>}, {pipeline_mode = #tpu.pipeline_mode<synchronous>, transform_indices = @transform_2, window_bounds = array<i64: 1, 64>}, {pipeline_mode = #tpu.pipeline_mode<synchronous>, transform_indices = @transform_3, window_bounds = array<i64: 64, 64>}, {pipeline_mode = #tpu.pipeline_mode<synchronous>, transform_indices = @transform_4, window_bounds = array<i64: 1, 64>}, {pipeline_mode = #tpu.pipeline_mode<synchronous>, transform_indices = @transform_5, window_bounds = array<i64: 64, 128>}, {pipeline_mode = #tpu.pipeline_mode<synchronous>, transform_indices = @transform_6, window_bounds = array<i64: 1, 128>}, {pipeline_mode = #tpu.pipeline_mode<synchronous>, transform_indices = @transform_7, window_bounds = array<i64: 128, 128>}, {pipeline_mode = #tpu.pipeline_mode<synchronous>, transform_indices = @transform_8, window_bounds = array<i64: 1, 128>}, {pipeline_mode = #tpu.pipeline_mode<synchronous>, transform_indices = @transform_9, window_bounds = array<i64: 3, 256>}, {pipeline_mode = #tpu.pipeline_mode<synchronous>, transform_indices = @transform_10, window_bounds = array<i64: 128, 256>}, {pipeline_mode = #tpu.pipeline_mode<synchronous>, transform_indices = @transform_11, window_bounds = array<i64: 1, 256>}, {pipeline_mode = #tpu.pipeline_mode<synchronous>, transform_indices = @transform_12, window_bounds = array<i64: 256, 256>}, {pipeline_mode = #tpu.pipeline_mode<synchronous>, transform_indices = @transform_13, window_bounds = array<i64: 1, 256>}, {pipeline_mode = #tpu.pipeline_mode<synchronous>, transform_indices = @transform_14, window_bounds = array<i64: 256, 128>}, {pipeline_mode = #tpu.pipeline_mode<synchronous>, transform_indices = @transform_15, window_bounds = array<i64: 1, 128>}, {pipeline_mode = #tpu.pipeline_mode<synchronous>, transform_indices = @transform_16, window_bounds = array<i64: 128, 128>}, {transform_indices = @transform_17, window_bounds = array<i64: 1, 16, 128>}]} {
    %c0 = arith.constant 0 : index
    %c0_0 = arith.constant 0 : index
    %c0_1 = arith.constant 0 : index
    %0 = vector.load %arg1[%c0, %c0_0, %c0_1] : memref<1x16x3xf32, #tpu.memory_space<vmem>>, vector<1x16x3xf32>
    %1 = vector.shape_cast %0 : vector<1x16x3xf32> to vector<16x3xf32>
    %c0_2 = arith.constant 0 : index
    %c0_3 = arith.constant 0 : index
    %2 = vector.load %arg2[%c0_2, %c0_3] : memref<3x64xf32, #tpu.memory_space<vmem>>, vector<3x64xf32>
    %cst = arith.constant dense<0.000000e+00> : vector<16x64xf32>
    %3 = tpu.matmul %1, %2, %cst {dimension_numbers = #tpu.dot_dimension_numbers<[1], [0], [0], [1], [0, 0, 1, 1], [], []>} : vector<16x3xf32>, vector<3x64xf32>, vector<16x64xf32> -> vector<16x64xf32>
    %c0_4 = arith.constant 0 : index
    %c0_5 = arith.constant 0 : index
    %4 = vector.load %arg3[%c0_4, %c0_5] : memref<1x64xf32, #tpu.memory_space<vmem>>, vector<1x64xf32>
    %5 = vector.broadcast %4 : vector<1x64xf32> to vector<16x64xf32>
    %6 = arith.addf %3, %5 : vector<16x64xf32>
    %cst_6 = arith.constant 0.000000e+00 : f32
    %7 = vector.broadcast %cst_6 : f32 to vector<16x64xf32>
    %8 = arith.maximumf %6, %7 : vector<16x64xf32>
    %c0_7 = arith.constant 0 : index
    %c0_8 = arith.constant 0 : index
    %9 = vector.load %arg4[%c0_7, %c0_8] : memref<64x64xf32, #tpu.memory_space<vmem>>, vector<64x64xf32>
    %cst_9 = arith.constant dense<0.000000e+00> : vector<16x64xf32>
    %10 = tpu.matmul %8, %9, %cst_9 {dimension_numbers = #tpu.dot_dimension_numbers<[1], [0], [0], [1], [0, 0, 1, 1], [], []>} : vector<16x64xf32>, vector<64x64xf32>, vector<16x64xf32> -> vector<16x64xf32>
    %c0_10 = arith.constant 0 : index
    %c0_11 = arith.constant 0 : index
    %11 = vector.load %arg5[%c0_10, %c0_11] : memref<1x64xf32, #tpu.memory_space<vmem>>, vector<1x64xf32>
    %12 = vector.broadcast %11 : vector<1x64xf32> to vector<16x64xf32>
    %13 = arith.addf %10, %12 : vector<16x64xf32>
    %cst_12 = arith.constant 0.000000e+00 : f32
    %14 = vector.broadcast %cst_12 : f32 to vector<16x64xf32>
    %15 = arith.maximumf %13, %14 : vector<16x64xf32>
    %c0_13 = arith.constant 0 : index
    %c0_14 = arith.constant 0 : index
    %16 = vector.load %arg6[%c0_13, %c0_14] : memref<64x128xf32, #tpu.memory_space<vmem>>, vector<64x128xf32>
    %cst_15 = arith.constant dense<0.000000e+00> : vector<16x128xf32>
    %17 = tpu.matmul %15, %16, %cst_15 {dimension_numbers = #tpu.dot_dimension_numbers<[1], [0], [0], [1], [0, 0, 1, 1], [], []>} : vector<16x64xf32>, vector<64x128xf32>, vector<16x128xf32> -> vector<16x128xf32>
    %c0_16 = arith.constant 0 : index
    %c0_17 = arith.constant 0 : index
    %18 = vector.load %arg7[%c0_16, %c0_17] : memref<1x128xf32, #tpu.memory_space<vmem>>, vector<1x128xf32>
    %19 = vector.broadcast %18 : vector<1x128xf32> to vector<16x128xf32>
    %20 = arith.addf %17, %19 : vector<16x128xf32>
    %cst_18 = arith.constant 0.000000e+00 : f32
    %21 = vector.broadcast %cst_18 : f32 to vector<16x128xf32>
    %22 = arith.maximumf %20, %21 : vector<16x128xf32>
    %c0_19 = arith.constant 0 : index
    %c0_20 = arith.constant 0 : index
    %23 = vector.load %arg8[%c0_19, %c0_20] : memref<128x128xf32, #tpu.memory_space<vmem>>, vector<128x128xf32>
    %cst_21 = arith.constant dense<0.000000e+00> : vector<16x128xf32>
    %24 = tpu.matmul %22, %23, %cst_21 {dimension_numbers = #tpu.dot_dimension_numbers<[1], [0], [0], [1], [0, 0, 1, 1], [], []>} : vector<16x128xf32>, vector<128x128xf32>, vector<16x128xf32> -> vector<16x128xf32>
    %c0_22 = arith.constant 0 : index
    %c0_23 = arith.constant 0 : index
    %25 = vector.load %arg9[%c0_22, %c0_23] : memref<1x128xf32, #tpu.memory_space<vmem>>, vector<1x128xf32>
    %26 = vector.broadcast %25 : vector<1x128xf32> to vector<16x128xf32>
    %27 = arith.addf %24, %26 : vector<16x128xf32>
    %cst_24 = arith.constant 0.000000e+00 : f32
    %28 = vector.broadcast %cst_24 : f32 to vector<16x128xf32>
    %29 = arith.maximumf %27, %28 : vector<16x128xf32>
    %cst_25 = arith.constant dense<0xFF800000> : vector<128xf32>
    %30 = vector.multi_reduction <maximumf>, %29, %cst_25 [0] : vector<16x128xf32> to vector<128xf32>
    %31 = vector.shape_cast %30 : vector<128xf32> to vector<1x128xf32>
    %c0_26 = arith.constant 0 : index
    %c0_27 = arith.constant 0 : index
    %32 = vector.load %arg10[%c0_26, %c0_27] : memref<3x256xf32, #tpu.memory_space<vmem>>, vector<3x256xf32>
    %cst_28 = arith.constant dense<0.000000e+00> : vector<16x256xf32>
    %33 = tpu.matmul %1, %32, %cst_28 {dimension_numbers = #tpu.dot_dimension_numbers<[1], [0], [0], [1], [0, 0, 1, 1], [], []>} : vector<16x3xf32>, vector<3x256xf32>, vector<16x256xf32> -> vector<16x256xf32>
    %c0_29 = arith.constant 0 : index
    %c0_30 = arith.constant 0 : index
    %34 = vector.load %arg11[%c0_29, %c0_30] : memref<128x256xf32, #tpu.memory_space<vmem>>, vector<128x256xf32>
    %cst_31 = arith.constant dense<0.000000e+00> : vector<1x256xf32>
    %35 = tpu.matmul %31, %34, %cst_31 {dimension_numbers = #tpu.dot_dimension_numbers<[1], [0], [0], [1], [0, 0, 1, 1], [], []>} : vector<1x128xf32>, vector<128x256xf32>, vector<1x256xf32> -> vector<1x256xf32>
    %36 = vector.broadcast %35 : vector<1x256xf32> to vector<16x256xf32>
    %37 = arith.addf %33, %36 : vector<16x256xf32>
    %c0_32 = arith.constant 0 : index
    %c0_33 = arith.constant 0 : index
    %38 = vector.load %arg12[%c0_32, %c0_33] : memref<1x256xf32, #tpu.memory_space<vmem>>, vector<1x256xf32>
    %39 = vector.broadcast %38 : vector<1x256xf32> to vector<16x256xf32>
    %40 = arith.addf %37, %39 : vector<16x256xf32>
    %cst_34 = arith.constant 0.000000e+00 : f32
    %41 = vector.broadcast %cst_34 : f32 to vector<16x256xf32>
    %42 = arith.maximumf %40, %41 : vector<16x256xf32>
    %c0_35 = arith.constant 0 : index
    %c0_36 = arith.constant 0 : index
    %43 = vector.load %arg13[%c0_35, %c0_36] : memref<256x256xf32, #tpu.memory_space<vmem>>, vector<256x256xf32>
    %cst_37 = arith.constant dense<0.000000e+00> : vector<16x256xf32>
    %44 = tpu.matmul %42, %43, %cst_37 {dimension_numbers = #tpu.dot_dimension_numbers<[1], [0], [0], [1], [0, 0, 1, 1], [], []>} : vector<16x256xf32>, vector<256x256xf32>, vector<16x256xf32> -> vector<16x256xf32>
    %c0_38 = arith.constant 0 : index
    %c0_39 = arith.constant 0 : index
    %45 = vector.load %arg14[%c0_38, %c0_39] : memref<1x256xf32, #tpu.memory_space<vmem>>, vector<1x256xf32>
    %46 = vector.broadcast %45 : vector<1x256xf32> to vector<16x256xf32>
    %47 = arith.addf %44, %46 : vector<16x256xf32>
    %cst_40 = arith.constant 0.000000e+00 : f32
    %48 = vector.broadcast %cst_40 : f32 to vector<16x256xf32>
    %49 = arith.maximumf %47, %48 : vector<16x256xf32>
    %c0_41 = arith.constant 0 : index
    %c0_42 = arith.constant 0 : index
    %50 = vector.load %arg15[%c0_41, %c0_42] : memref<256x128xf32, #tpu.memory_space<vmem>>, vector<256x128xf32>
    %cst_43 = arith.constant dense<0.000000e+00> : vector<16x128xf32>
    %51 = tpu.matmul %49, %50, %cst_43 {dimension_numbers = #tpu.dot_dimension_numbers<[1], [0], [0], [1], [0, 0, 1, 1], [], []>} : vector<16x256xf32>, vector<256x128xf32>, vector<16x128xf32> -> vector<16x128xf32>
    %c0_44 = arith.constant 0 : index
    %c0_45 = arith.constant 0 : index
    %52 = vector.load %arg16[%c0_44, %c0_45] : memref<1x128xf32, #tpu.memory_space<vmem>>, vector<1x128xf32>
    %53 = vector.broadcast %52 : vector<1x128xf32> to vector<16x128xf32>
    %54 = arith.addf %51, %53 : vector<16x128xf32>
    %cst_46 = arith.constant dense<0xFF800000> : vector<16xf32>
    %55 = vector.multi_reduction <maximumf>, %54, %cst_46 [1] : vector<16x128xf32> to vector<16xf32>
    %56 = vector.shape_cast %55 : vector<16xf32> to vector<16x1xf32>
    %57 = vector.broadcast %56 : vector<16x1xf32> to vector<16x128xf32>
    %58 = arith.subf %54, %57 : vector<16x128xf32>
    %59 = math.exp %58 : vector<16x128xf32>
    %c0_47 = arith.constant 0 : index
    %c0_48 = arith.constant 0 : index
    %60 = vector.load %arg17[%c0_47, %c0_48] : memref<128x128xf32, #tpu.memory_space<vmem>>, vector<128x128xf32>
    %cst_49 = arith.constant dense<0.000000e+00> : vector<16x128xf32>
    %61 = tpu.matmul %59, %60, %cst_49 {dimension_numbers = #tpu.dot_dimension_numbers<[1], [0], [0], [1], [0, 0, 1, 1], [], []>} : vector<16x128xf32>, vector<128x128xf32>, vector<16x128xf32> -> vector<16x128xf32>
    %62 = arith.divf %59, %61 : vector<16x128xf32>
    %c0_50 = arith.constant 0 : index
    %c0_51 = arith.constant 0 : index
    %c0_52 = arith.constant 0 : index
    %63 = vector.load %arg18[%c0_50, %c0_51, %c0_52] : memref<1x16x128xf32, #tpu.memory_space<vmem>>, vector<1x16x128xf32>
    %64 = vector.shape_cast %63 : vector<1x16x128xf32> to vector<16x128xf32>
    %65 = vector.shape_cast %62 : vector<16x128xf32> to vector<1x16x128xf32>
    tpu.vector_store %arg18[%c0_50, %c0_51, %c0_52], %65 {strides = array<i32>} : memref<1x16x128xf32, #tpu.memory_space<vmem>>, vector<1x16x128xf32>,
    return
  }
  func.func @transform_0(%arg0: i32) -> (i32, i32, i32) {
    %c0_i32 = arith.constant 0 : i32
    %c0_i32_0 = arith.constant 0 : i32
    %c0_i32_1 = arith.constant 0 : i32
    return %arg0, %c0_i32, %c0_i32_0 : i32, i32, i32
  }
  func.func @transform_1(%arg0: i32) -> (i32, i32) {
    %c0_i32 = arith.constant 0 : i32
    %c0_i32_0 = arith.constant 0 : i32
    %c0_i32_1 = arith.constant 0 : i32
    return %c0_i32, %c0_i32_0 : i32, i32
  }
  func.func @transform_2(%arg0: i32) -> (i32, i32) {
    %c0_i32 = arith.constant 0 : i32
    %c0_i32_0 = arith.constant 0 : i32
    %c0_i32_1 = arith.constant 0 : i32
    return %c0_i32, %c0_i32_0 : i32, i32
  }
  func.func @transform_3(%arg0: i32) -> (i32, i32) {
    %c0_i32 = arith.constant 0 : i32
    %c0_i32_0 = arith.constant 0 : i32
    %c0_i32_1 = arith.constant 0 : i32
    return %c0_i32, %c0_i32_0 : i32, i32
  }
  func.func @transform_4(%arg0: i32) -> (i32, i32) {
    %c0_i32 = arith.constant 0 : i32
    %c0_i32_0 = arith.constant 0 : i32
    %c0_i32_1 = arith.constant 0 : i32
    return %c0_i32, %c0_i32_0 : i32, i32
  }
  func.func @transform_5(%arg0: i32) -> (i32, i32) {
    %c0_i32 = arith.constant 0 : i32
    %c0_i32_0 = arith.constant 0 : i32
    %c0_i32_1 = arith.constant 0 : i32
    return %c0_i32, %c0_i32_0 : i32, i32
  }
  func.func @transform_6(%arg0: i32) -> (i32, i32) {
    %c0_i32 = arith.constant 0 : i32
    %c0_i32_0 = arith.constant 0 : i32
    %c0_i32_1 = arith.constant 0 : i32
    return %c0_i32, %c0_i32_0 : i32, i32
  }
  func.func @transform_7(%arg0: i32) -> (i32, i32) {
    %c0_i32 = arith.constant 0 : i32
    %c0_i32_0 = arith.constant 0 : i32
    %c0_i32_1 = arith.constant 0 : i32
    return %c0_i32, %c0_i32_0 : i32, i32
  }
  func.func @transform_8(%arg0: i32) -> (i32, i32) {
    %c0_i32 = arith.constant 0 : i32
    %c0_i32_0 = arith.constant 0 : i32
    %c0_i32_1 = arith.constant 0 : i32
    return %c0_i32, %c0_i32_0 : i32, i32
  }
  func.func @transform_9(%arg0: i32) -> (i32, i32) {
    %c0_i32 = arith.constant 0 : i32
    %c0_i32_0 = arith.constant 0 : i32
    %c0_i32_1 = arith.constant 0 : i32
    return %c0_i32, %c0_i32_0 : i32, i32
  }
  func.func @transform_10(%arg0: i32) -> (i32, i32) {
    %c0_i32 = arith.constant 0 : i32
    %c0_i32_0 = arith.constant 0 : i32
    %c0_i32_1 = arith.constant 0 : i32
    return %c0_i32, %c0_i32_0 : i32, i32
  }
  func.func @transform_11(%arg0: i32) -> (i32, i32) {
    %c0_i32 = arith.constant 0 : i32
    %c0_i32_0 = arith.constant 0 : i32
    %c0_i32_1 = arith.constant 0 : i32
    return %c0_i32, %c0_i32_0 : i32, i32
  }
  func.func @transform_12(%arg0: i32) -> (i32, i32) {
    %c0_i32 = arith.constant 0 : i32
    %c0_i32_0 = arith.constant 0 : i32
    %c0_i32_1 = arith.constant 0 : i32
    return %c0_i32, %c0_i32_0 : i32, i32
  }
  func.func @transform_13(%arg0: i32) -> (i32, i32) {
    %c0_i32 = arith.constant 0 : i32
    %c0_i32_0 = arith.constant 0 : i32
    %c0_i32_1 = arith.constant 0 : i32
    return %c0_i32, %c0_i32_0 : i32, i32
  }
  func.func @transform_14(%arg0: i32) -> (i32, i32) {
    %c0_i32 = arith.constant 0 : i32
    %c0_i32_0 = arith.constant 0 : i32
    %c0_i32_1 = arith.constant 0 : i32
    return %c0_i32, %c0_i32_0 : i32, i32
  }
  func.func @transform_15(%arg0: i32) -> (i32, i32) {
    %c0_i32 = arith.constant 0 : i32
    %c0_i32_0 = arith.constant 0 : i32
    %c0_i32_1 = arith.constant 0 : i32
    return %c0_i32, %c0_i32_0 : i32, i32
  }
  func.func @transform_16(%arg0: i32) -> (i32, i32) {
    %c0_i32 = arith.constant 0 : i32
    %c0_i32_0 = arith.constant 0 : i32
    %c0_i32_1 = arith.constant 0 : i32
    return %c0_i32, %c0_i32_0 : i32, i32
  }
  func.func @transform_17(%arg0: i32) -> (i32, i32, i32) {
    %c0_i32 = arith.constant 0 : i32
    %c0_i32_0 = arith.constant 0 : i32
    %c0_i32_1 = arith.constant 0 : i32
    return %arg0, %c0_i32, %c0_i32_0 : i32, i32, i32
  }
}

</mosaic_0001>

<bundles_post_ra>
// kernel: conditional_probability_model.1
= control target key start
LH: loop header
LB: loop body
LE: loop exit
PB: predicated region body
PF: predicated region fallthrough
CT: control target
= control target key end

     0   :  { %s2616_s0 = inlined_call_operand.vmem [shape: f32[2,16,3], index: 0, kind: input, shape index: {}]   ;;  %s2617_s1 = inlined_call_operand.vmem [shape: f32[3,64], index: 1, kind: input, shape index: {}]   ;;  %s2618_s2 = inlined_call_operand.vmem [shape: f32[1,64], index: 2, kind: input, shape index: {}]   ;;  %s2619_s3 = inlined_call_operand.hbm [shape: f32[64,64], index: 3, kind: input, shape index: {}]   ;;  %s2620_s4 = inlined_call_operand.vmem [shape: f32[1,64], index: 4, kind: input, shape index: {}]   ;;  %s2621_s5 = inlined_call_operand.hbm [shape: f32[64,128], index: 5, kind: input, shape index: {}]   ;;  %s2622_s6 = inlined_call_operand.vmem [shape: f32[1,128], index: 6, kind: input, shape index: {}]   ;;  %s2623_s7 = inlined_call_operand.hbm [shape: f32[128,128], index: 7, kind: input, shape index: {}]   ;;  %s2624_s8 = inlined_call_operand.vmem [shape: f32[1,128], index: 8, kind: input, shape index: {}]   ;;  %s2625_s9 = inlined_call_operand.vmem [shape: f32[3,256], index: 9, kind: input, shape index: {}]   ;;  %s2626_s10 = inlined_call_operand.hbm [shape: f32[128,256], index: 10, kind: input, shape index: {}]   ;;  %s2627_s11 = inlined_call_operand.vmem [shape: f32[1,256], index: 11, kind: input, shape index: {}]   ;;  %s2628_s12 = inlined_call_operand.hbm [shape: f32[256,256], index: 12, kind: input, shape index: {}]   ;;  %s2629_s13 = inlined_call_operand.vmem [shape: f32[1,256], index: 13, kind: input, shape index: {}]   ;;  %s2630_s14 = inlined_call_operand.hbm [shape: f32[256,128], index: 14, kind: input, shape index: {}]   ;;  %s2631_s15 = inlined_call_operand.vmem [shape: f32[1,128], index: 15, kind: input, shape index: {}]   ;;  %s2632_s16 = inlined_call_operand.hbm [shape: f32[128,128], index: 16, kind: input, shape index: {}]   ;;  %s2633_s17 = inlined_call_operand.vmem [shape: f32[2,16,128], index: 17, kind: output, shape index: {}]  }
   0x1   :  { %2638 = sst [smem:[#allocation17_spill]] %s2616_s0 }
   0x2   :  { %2639 = sst [smem:[#allocation18_spill]] %s2617_s1 }
   0x3   :  { %2640 = sst [smem:[#allocation19_spill]] %s2621_s5 }
   0x4   :  { %22 = vsyncpa [#allocation3], 0 }
   0x5   :  { %23 = vsyncpa [#allocation5], 0 }
   0x6   :  { %24 = vsyncpa [#allocation8], 0 }
   0x7   :  { %25 = vsyncpa [#allocation11], 0  ;;  %s2424_s24 = smov 0  }
   0x8 LB: > { %s2430_s25 = sadd.s32 4294967295, %s2320_s24   ;;  %p1772_p0 = scmp.ge.s32.totalorder %s2320_s24, 1  ;;  %s2320_s24 = sphi %s2424_s24, %s31_s24  }
   0x9   : > { %p424_p1 = scmp.lt.s32.totalorder %s2320_s24, 3  ;;  %p2073_p2 = scmp.eq.s32.totalorder %s2430_s25, 0 }
   0xa   : > { %s2322_s27 = smov [#allocation4]   ;;  %s2323_s29 = smov [#allocation7]  }
   0xb   : > { %p2435_p3 = pnand %p1772_p0, %p424_p1  ;;  %s458_s28 = sshll.u32 %s2322_s27, 4  ;;  %s459_s28 = int_to_ptr.vmem [resolvable:$true] %s458_s28 }
   0xc   : > { %s493_s0 = sshll.u32 %s2323_s29, 4  ;;  %s2324_s18 = smov [#allocation10]   ;;  %s2441_s0 = int_to_ptr.vmem [resolvable:$true] %s493_s0 }
   0xd   : > { %p2051_p4 = pneg %p2435_p3  ;;  %s2449_s19 = sshll.u32 %s2324_s18, 4  ;;  %s526_s19 = int_to_ptr.vmem [resolvable:$true] %s2449_s19 }
   0xe   : > { %s2127_s20 = scalar_lea.vmem %s459_s28, 1024  ;;  %p2135_p10 = scmp.lt.s32.totalorder %s459_s28, %s459_s28 }
   0xf   : > { %p2445_p5 = pnand %p2073_p2, %p2051_p4  ;;  %p2128_p7 = scmp.ne.s32.totalorder %s459_s28, %s2127_s20 }
  0x10   : > { %p2136_p11 = scmp.lt.s32.totalorder %s2127_s20, %s2127_s20 }
  0x11   : > { %p2453_p6 = pneg %p2445_p5 }
  0x12   : > { %p2137_p12 = por %p2136_p11, %p2135_p10 }
  0x13   : > { %p2130_p8 = pnand %p2128_p7, %p2453_p6 }
  0x15   : > { %p2131_p9 = pneg %p2130_p8 }
  0x17   : > { %p2138_p13 = pnand %p2137_p12, %p2131_p9 }
  0x19   : > { %2141 = shalt.err (!%p2138_p13)
}
  0x1a   : > { %s2634_s21 = smov 128   ;;  %s2326_s22 = smov 8  }
  0x1b   : > { %s2644_s5 = sld [smem:[#allocation19_spill]]  ;;  %s2153_s29 = scalar_lea.vmem %s2441_s0, 4096 }
  0x1c   : > { %p2154_p0 = scmp.ne.s32.totalorder %s2441_s0, %s2153_s29  ;;  %p2161_p7 = scmp.lt.s32.totalorder %s2441_s0, %s2441_s0 }
  0x1d   : > { %p2162_p8 = scmp.lt.s32.totalorder %s2153_s29, %s2153_s29 }
  0x1e   : > { %p2156_p1 = pnand %p2154_p0, %p2453_p6 }
  0x1f   : > { %p2163_p9 = por %p2162_p8, %p2161_p7 }
  0x20   : > { %p2157_p4 = pneg %p2156_p1 }
  0x21   : > { %2057 = dma.hbm_to_vmem [thread:$0]  (!%p2445_p5), %s2644_s5, 1024, %s459_s28, [#allocation5], %s2634_s21, %s2634_s21, %s2326_s22  }
  0x22   : > { %p2164_p10 = pnand %p2163_p9, %p2157_p4 }
  0x24   : > { %2167 = shalt.err (!%p2164_p10)
}
  0x25   : > { %s2636_s18 = smov 256   ;;  %s2637_s20 = smov 16  }
  0x26   : > { %2063 = dma.hbm_to_vmem [thread:$0]  (!%p2445_p5), %s2626_s10, 4096, %s2441_s0, [#allocation8], %s2636_s18, %s2636_s18, %s2637_s20  }
  0x27   : > { %s2329_s27 = smov [#allocation2]   ;;  %s2179_s21 = scalar_lea.vmem %s526_s19, 4096 }
  0x28   : > { %s442_s29 = sshll.u32 %s2329_s27, 4  ;;  %p2180_p11 = scmp.ne.s32.totalorder %s526_s19, %s2179_s21  ;;  %s443_s29 = int_to_ptr.vmem [resolvable:$true] %s442_s29 }
  0x29   : > { %p2187_p0 = scmp.lt.s32.totalorder %s526_s19, %s526_s19  ;;  %p2188_p1 = scmp.lt.s32.totalorder %s2179_s21, %s2179_s21 }
  0x2a   : > { %p2182_p12 = pnand %p2180_p11, %p2453_p6 }
  0x2b   : > { %p2189_p4 = por %p2188_p1, %p2187_p0 }
  0x2c   : > { %p2183_p13 = pneg %p2182_p12 }
  0x2e   : > { %p2190_p7 = pnand %p2189_p4, %p2183_p13 }
  0x30   : > { %2193 = shalt.err (!%p2190_p7)
}
  0x31   : > { %s2645_s5 = smov 128   ;;  %s2205_s23 = scalar_lea.vmem %s443_s29, 1024 }
  0x32   : > { %2069 = dma.hbm_to_vmem [thread:$0]  (!%p2445_p5), %s2630_s14, 4096, %s526_s19, [#allocation11], %s2645_s5, %s2645_s5, %s2326_s22  }
  0x33   : > { %p2206_p8 = scmp.ne.s32.totalorder %s443_s29, %s2205_s23  ;;  %p2213_p11 = scmp.lt.s32.totalorder %s443_s29, %s443_s29 }
  0x34   : > { %p2214_p12 = scmp.lt.s32.totalorder %s2205_s23, %s2205_s23 }
  0x35   : > { %p2208_p9 = pnand %p2206_p8, %p2453_p6 }
  0x36   : > { %p2215_p13 = por %p2214_p12, %p2213_p11 }
  0x37   : > { %p2209_p10 = pneg %p2208_p9 }
  0x39   : > { %p2216_p0 = pnand %p2215_p13, %p2209_p10 }
  0x3b   : > { %2219 = shalt.err (!%p2216_p0)
}
  0x3c   : > { %2054 = dma.hbm_to_vmem [thread:$0]  (!%p2445_p5), %s2619_s3, 1024, %s443_s29, [#allocation3], %s2645_s5, %s2645_s5, %s2326_s22  }
  0x3d   : > { %s2330_s19 = smov [#allocation6]   ;;  %s2331_s0 = smov [#allocation9]  }
  0x3e   : > { %s474_s28 = sshll.u32 %s2330_s19, 4  ;;  %s509_s18 = sshll.u32 %s2331_s0, 4  ;;  %s475_s28 = int_to_ptr.vmem [resolvable:$true] %s474_s28  ;;  %s510_s18 = int_to_ptr.vmem [resolvable:$true] %s509_s18 }
  0x3f   : > { %s2231_s20 = scalar_lea.vmem %s475_s28, 2048  ;;  %p2239_p8 = scmp.lt.s32.totalorder %s475_s28, %s475_s28 }
  0x40   : > { %p2232_p1 = scmp.ne.s32.totalorder %s475_s28, %s2231_s20  ;;  %p2240_p9 = scmp.lt.s32.totalorder %s2231_s20, %s2231_s20 }
  0x42   : > { %p2234_p4 = pnand %p2232_p1, %p2453_p6  ;;  %p2241_p10 = por %p2240_p9, %p2239_p8 }
  0x44   : > { %p2235_p7 = pneg %p2234_p4 }
  0x46   : > { %p2242_p11 = pnand %p2241_p10, %p2235_p7 }
  0x48   : > { %2245 = shalt.err (!%p2242_p11)
}
  0x49   : > { %2060 = dma.hbm_to_vmem [thread:$0]  (!%p2445_p5), %s2623_s7, 2048, %s475_s28, [#allocation5], %s2645_s5, %s2645_s5, %s2326_s22  }
  0x4a   : > { %s2257_s21 = scalar_lea.vmem %s510_s18, 8192  ;;  %p2265_p1 = scmp.lt.s32.totalorder %s510_s18, %s510_s18 }
  0x4b   : > { %p2258_p12 = scmp.ne.s32.totalorder %s510_s18, %s2257_s21  ;;  %p2266_p4 = scmp.lt.s32.totalorder %s2257_s21, %s2257_s21 }
  0x4d   : > { %p2260_p13 = pnand %p2258_p12, %p2453_p6  ;;  %p2267_p7 = por %p2266_p4, %p2265_p1 }
  0x4f   : > { %p2261_p0 = pneg %p2260_p13 }
  0x51   : > { %p2268_p8 = pnand %p2267_p7, %p2261_p0 }
  0x53   : > { %2271 = shalt.err (!%p2268_p8)
}
  0x54   : > { %s2646_s20 = smov 16   ;;  %s2647_s27 = smov 256  }
  0x55   : > { %2066 = dma.hbm_to_vmem [thread:$0]  (!%p2445_p5), %s2628_s12, 8192, %s510_s18, [#allocation8], %s2647_s27, %s2647_s27, %s2646_s20  }
  0x56   : > { %s2332_s28 = smov [#allocation12]  }
  0x57   : > { %s541_s29 = sshll.u32 %s2332_s28, 4  ;;  %s542_s29 = int_to_ptr.vmem [resolvable:$true] %s541_s29 }
  0x58   : > { %s2283_s23 = scalar_lea.vmem %s542_s29, 2048  ;;  %p2291_p12 = scmp.lt.s32.totalorder %s542_s29, %s542_s29 }
  0x59   : > { %p2284_p9 = scmp.ne.s32.totalorder %s542_s29, %s2283_s23  ;;  %p2292_p13 = scmp.lt.s32.totalorder %s2283_s23, %s2283_s23 }
  0x5b   : > { %p2286_p10 = pnand %p2284_p9, %p2453_p6  ;;  %p2293_p0 = por %p2292_p13, %p2291_p12 }
  0x5d   : > { %p2287_p11 = pneg %p2286_p10 }
  0x5f   : > { %p2294_p1 = pnand %p2293_p0, %p2287_p11 }
  0x61   : > { %2297 = shalt.err (!%p2294_p1)
}
  0x62   : > { %2072 = dma.hbm_to_vmem [thread:$0]  (!%p2445_p5), %s2632_s16, 2048, %s542_s29, [#allocation11], %s2645_s5, %s2645_s5, %s2326_s22  }
  0x63   : > { %565 = sbr.rel (%p2435_p3) target bundleno = 1909 (0x775), region = 88 }
  0x68   : > { %2303 = dma.done.wait (%p2073_p2), [#allocation3], 1024  }
  0x69   : > { %2305 = vsyncadd (%p2073_p2), [#allocation3], 4294966272 }
  0x6a   : > { %2307 = dma.done.wait (%p2073_p2), [#allocation5], 3072  }
  0x6b   : > { %2309 = vsyncadd (%p2073_p2), [#allocation5], 4294964224 }
  0x6c   : > { %2311 = dma.done.wait (%p2073_p2), [#allocation8], 12288  }
  0x6d   : > { %2313 = vsyncadd (%p2073_p2), [#allocation8], 4294955008 }
  0x6e   : > { %2315 = dma.done.wait (%p2073_p2), [#allocation11], 6144  }
  0x6f   : > { %2317 = vsyncadd (%p2073_p2), [#allocation11], 4294961152  ;;  %p641_p3 = scmp.lt.s32.totalorder %s2430_s25, 1  ;;  %vm668_vm0 = vcmask 1042432   ;;  %s2648_s1 = sld [smem:[#allocation17_spill]]  ;;  %vm661_vm1 = vcmask 23552  }
  0x70   : > { %s2649_s19 = sld [smem:[#allocation18_spill]]  ;;  %v756_v3 = vld [vmem:[#allocation2 + $0x38] sm:$0xff]  ;;  %v755_v4 = vld [vmem:[#allocation2 + $0x30] sm:$0xff]  ;;  %v754_v5 = vld [vmem:[#allocation2 + $0x28] sm:$0xff]  ;;  %vm764_vm2 = vcmask 523264  }
  0x71   : > { %s2651_s25 = smov (!%p641_p3, %s2430_s25), 1  ;;  %1915 = vmatprep.subr.mxu1 %v756_v3  ;;  %v753_v6 = vld [vmem:[#allocation2 + $0x20] sm:$0xff]  ;;  %v752_v7 = vld [vmem:[#allocation2 + $0x18] sm:$0xff]  ;;  %v751_v8 = vld [vmem:[#allocation2 + $0x10] sm:$0xff] }
  0x72   : > { %s1811_s5 = sshll.u32 %s2651_s25, 4  ;;  %1916 = vmatpush3.msra.mxu1 %v756_v3  ;;  %v750_v9 = vld [vmem:[#allocation2 + $0x8] sm:$0xff]  ;;  %v749_v10 = vld [vmem:[#allocation2] sm:$0xff]  ;;  %v855_v11 = vld [vmem:[#allocation4 + $0x38] sm:$0xff] }
  0x73   : > { %1917 = vmatprep.subr.mxu1 %v755_v4  ;;  %v854_v12 = vld [vmem:[#allocation4 + $0x30] sm:$0xff]  ;;  %v853_v13 = vld [vmem:[#allocation4 + $0x28] sm:$0xff]  ;;  %v852_v14 = vld [vmem:[#allocation4 + $0x20] sm:$0xff]  ;;  %s650_s18 = scalar_lea.vmem %s2633_s17, %s1811_s5 }
  0x74   : > { %1918 = vmatpush3.msra.mxu1 %v755_v4  ;;  %v1793_v15 = vld [vmem:[%s2618_s2] ss:$0 sm:$0xff]  ;;  %v851_v22 = vld [vmem:[#allocation4 + $0x18] sm:$0xff]  ;;  %v850_v23 = vld [vmem:[#allocation4 + $0x10] sm:$0xff] }
  0x75   : > { %s645_s22 = scalar_lea.vmem %s2648_s1, %s1811_s5  ;;  %1919 = vmatprep.subr.mxu1 %v754_v5  ;;  %v849_v24 = vld [vmem:[#allocation4 + $0x8] sm:$0xff]  ;;  %v848_v25 = vld [vmem:[#allocation4] sm:$0xff]  ;;  %v961_v26 = vld [vmem:[#allocation6 + $0x78] sm:$0xff] }
  0x76   : > { %v653_v0 = vld [vmem:[%s2649_s19] sm:$0x7]  ;;  %v2566_v2 = vld [vmem:[%s645_s22 + $0x8] sm:$0xff]  ;;  %1920 = vmatpush3.msra.mxu1 %v754_v5  ;;  %v960_v27 = vld [vmem:[#allocation6 + $0x70] sm:$0xff] }
  0x77   : > { %v2564_v1 = vld [vmem:[%s645_s22] sm:$0xff]  ;;  %1910 = vmatprep.subr.msk.mxu0 %vm668_vm0, %v653_v0  ;;  %1921 = vmatprep.subr.mxu1 %v753_v6  ;;  %v959_v28 = vld [vmem:[#allocation6 + $0x68] sm:$0xff]  ;;  %v957_v30 = vld [vmem:[#allocation6 + $0x58] sm:$0xff] }
  0x78   : > { %1912 = vmatprep.mubr.msk.f32.mxu0 %vm661_vm1, %v2564_v1  ;;  %1911 = vmatpush3.msk.msra.mxu0 %vm668_vm0, %v653_v0  ;;  %v958_v29 = vld [vmem:[#allocation6 + $0x60] sm:$0xff]  ;;  %v956_v31 = vld [vmem:[#allocation6 + $0x50] sm:$0xff]  ;;  %v955_v32 = vld [vmem:[#allocation6 + $0x48] sm:$0xff] }
  0x79   : > { %1913 = vmatmul.mubr.msk.f32.vlgmr.msra.gmra.mxu0 %vm661_vm1, %v2566_v2  ;;  %1922 = vmatpush3.msra.mxu1 %v753_v6  ;;  %v954_v33 = vld [vmem:[#allocation6 + $0x40] sm:$0xff]  ;;  %v953_v34 = vld [vmem:[#allocation6 + $0x38] sm:$0xff]  ;;  %v952_v35 = vld [vmem:[#allocation6 + $0x30] sm:$0xff] }
  0x7a   : > { %1923 = vmatprep.subr.mxu1 %v752_v7  ;;  %1934 = vmatprep.subr.mxu0 %v855_v11  ;;  %v951_v36 = vld [vmem:[#allocation6 + $0x28] sm:$0xff]  ;;  %v950_v37 = vld [vmem:[#allocation6 + $0x20] sm:$0xff]  ;;  %v949_v45 = vld [vmem:[#allocation6 + $0x18] sm:$0xff] }
  0x7b   : > { %1924 = vmatpush3.msra.mxu1 %v752_v7  ;;  %1935 = vmatpush3.msra.mxu0 %v855_v11  ;;  %v1797_v38 = vld [vmem:[%s2620_s4] ss:$0 sm:$0xff]  ;;  %v948_v46 = vld [vmem:[#allocation6 + $0x10] sm:$0xff]  ;;  %v947_v47 = vld [vmem:[#allocation6 + $0x8] sm:$0xff] }
  0x7c   : > { %1925 = vmatprep.subr.mxu1 %v751_v8  ;;  %1936 = vmatprep.subr.mxu0 %v854_v12  ;;  %v946_v48 = vld [vmem:[#allocation6] sm:$0xff]  ;;  %v1085_v49 = vld [vmem:[#allocation7 + $0xf8] sm:$0xff]  ;;  %v1084_v50 = vld [vmem:[#allocation7 + $0xf0] sm:$0xff] }
  0x7d   : > { %1926 = vmatpush3.msra.mxu1 %v751_v8  ;;  %1937 = vmatpush3.msra.mxu0 %v854_v12  ;;  %v1083_v51 = vld [vmem:[#allocation7 + $0xe8] sm:$0xff]  ;;  %v1082_v52 = vld [vmem:[#allocation7 + $0xe0] sm:$0xff]  ;;  %v1081_v53 = vld [vmem:[#allocation7 + $0xd8] sm:$0xff] }
  0x7e   : > { %1927 = vmatprep.subr.mxu1 %v750_v9  ;;  %1938 = vmatprep.subr.mxu0 %v853_v13  ;;  %v1080_v54 = vld [vmem:[#allocation7 + $0xd0] sm:$0xff]  ;;  %v1079_v55 = vld [vmem:[#allocation7 + $0xc8] sm:$0xff]  ;;  %v1078_v56 = vld [vmem:[#allocation7 + $0xc0] sm:$0xff] }
  0x7f   : > { %1928 = vmatpush3.msra.mxu1 %v750_v9  ;;  %1939 = vmatpush3.msra.mxu0 %v853_v13  ;;  %v1077_v57 = vld [vmem:[#allocation7 + $0xb8] sm:$0xff]  ;;  %v1076_v58 = vld [vmem:[#allocation7 + $0xb0] sm:$0xff]  ;;  %v1075_v59 = vld [vmem:[#allocation7 + $0xa8] sm:$0xff] }
  0x80   : > { %1929 = vmatprep.subr.mxu1 %v749_v10  ;;  %1940 = vmatprep.subr.mxu0 %v852_v14  ;;  %v1800_v60 = vld [vmem:[%s2622_s6] ss:$0 sm:$0xff]  ;;  %v1073_v6 = vld [vmem:[#allocation7 + $0x98] sm:$0xff]  ;;  %v1072_v7 = vld [vmem:[#allocation7 + $0x90] sm:$0xff] }
  0x81   : > { %1930 = vmatpush3.msra.mxu1 %v749_v10  ;;  %1941 = vmatpush3.msra.mxu0 %v852_v14  ;;  %v1074_v5 = vld [vmem:[#allocation7 + $0xa0] sm:$0xff]  ;;  %v1071_v8 = vld [vmem:[#allocation7 + $0x88] sm:$0xff]  ;;  %v1069_v10 = vld [vmem:[#allocation7 + $0x78] sm:$0xff] }
  0x82   : > { %1942 = vmatprep.subr.mxu0 %v851_v22  ;;  %1953 = vmatprep.subr.mxu1 %v961_v26  ;;  %v1070_v9 = vld [vmem:[#allocation7 + $0x80] sm:$0xff]  ;;  %v1068_v11 = vld [vmem:[#allocation7 + $0x70] sm:$0xff]  ;;  %v1067_v12 = vld [vmem:[#allocation7 + $0x68] sm:$0xff] }
  0x83   : > { %1943 = vmatpush3.msra.mxu0 %v851_v22  ;;  %v1066_v13 = vld [vmem:[#allocation7 + $0x60] sm:$0xff]  ;;  %v1065_v14 = vld [vmem:[#allocation7 + $0x58] sm:$0xff] }
  0x84   : > { %1944 = vmatprep.subr.mxu0 %v850_v23  ;;  %v1058_v22 = vld [vmem:[#allocation7 + $0x20] sm:$0xff] }
  0x85   : > { %1945 = vmatpush3.msra.mxu0 %v850_v23 }
  0x86   : > { %1946 = vmatprep.subr.mxu0 %v849_v24 }
  0x87   : > { %1947 = vmatpush3.msra.mxu0 %v849_v24  ;;  %v1057_v24 = vld [vmem:[#allocation7 + $0x18] sm:$0xff] }
  0x88   : > { %1948 = vmatprep.subr.mxu0 %v848_v25 }
  0x89   : > { %1949 = vmatpush3.msra.mxu0 %v848_v25  ;;  %v1056_v25 = vld [vmem:[#allocation7 + $0x10] sm:$0xff] }
  0x8a   : > { %1086 = vmatprep.subr.mxu0 %v1085_v49  ;;  %v1291_v49 = vld [vmem:[#allocation9 + $0xb8] sm:$0xff] }
 0x139   : > { %v1914_v16 = vpop.f32.mrf.mxu0 }
 0x13a   : > { %v744_v17 = vadd.f32 %v1914_v16, %v1793_v15  ;;  %v1063_v16 = vld [vmem:[#allocation7 + $0x48] sm:$0xff] }
 0x13b   : > { %v738_v18 = vpop.f32.mrf.mxu0 }
 0x13c   : > { %v739_v19 = vadd.f32 %v1793_v15, %v738_v18  ;;  %v748_v21 = vmax.f32 %v744_v17, 0.0  ;;  %v1064_v15 = vld [vmem:[#allocation7 + $0x50] sm:$0xff]  ;;  %v1062_v17 = vld [vmem:[#allocation7 + $0x40] sm:$0xff]  ;;  %v1061_v18 = vld [vmem:[#allocation7 + $0x38] sm:$0xff] }
 0x13e   : > { %v747_v20 = vmax.f32 %v739_v19, 0.0  ;;  %v1060_v19 = vld [vmem:[#allocation7 + $0x30] sm:$0xff] }
 0x140   : > { %1931 = vmatprep.mubr.msk.f32.mxu1 %vm764_vm2, %v747_v20  ;;  %v1059_v20 = vld [vmem:[#allocation7 + $0x28] sm:$0xff] }
 0x141   : > { %1932 = vmatmul.mubr.msk.f32.vlgmr.msra.gmra.mxu1 %vm764_vm2, %v748_v21  ;;  %v1053_v21 = vld [vmem:[%s2625_s9] sm:$0x77] }
 0x142   : > { %1954 = vmatpush3.msra.mxu1 %v961_v26  ;;  %v1166_v23 = vcombine.high %v1053_v21, %v1053_v21  ;;  %v1055_v26 = vld [vmem:[#allocation7 + $0x8] sm:$0xff] }
 0x143   : > { %1955 = vmatprep.subr.mxu1 %v960_v27 }
 0x144   : > { %1956 = vmatpush3.msra.mxu1 %v960_v27  ;;  %v1054_v27 = vld [vmem:[#allocation7] sm:$0xff] }
 0x145   : > { %1957 = vmatprep.subr.mxu1 %v959_v28 }
 0x146   : > { %1958 = vmatpush3.msra.mxu1 %v959_v28  ;;  %v2333_v28 = vmov 0.0  }
 0x147   : > { %1959 = vmatprep.subr.mxu1 %v958_v29 }
 0x148   : > { %1960 = vmatpush3.msra.mxu1 %v958_v29  ;;  %v1299_v29 = vld [vmem:[#allocation9 + $0xf8] sm:$0xff] }
 0x149   : > { %1961 = vmatprep.subr.mxu1 %v957_v30 }
 0x14a   : > { %1962 = vmatpush3.msra.mxu1 %v957_v30  ;;  %v1803_v30 = vld [vmem:[%s2624_s8] ss:$0 sm:$0xff] }
 0x14b   : > { %1963 = vmatprep.subr.mxu1 %v956_v31 }
 0x14c   : > { %1964 = vmatpush3.msra.mxu1 %v956_v31 }
 0x14d   : > { %1965 = vmatprep.subr.mxu1 %v955_v32 }
 0x14e   : > { %1966 = vmatpush3.msra.mxu1 %v955_v32 }
 0x14f   : > { %1967 = vmatprep.subr.mxu1 %v954_v33 }
 0x150   : > { %1968 = vmatpush3.msra.mxu1 %v954_v33 }
 0x151   : > { %1969 = vmatprep.subr.mxu1 %v953_v34 }
 0x152   : > { %1970 = vmatpush3.msra.mxu1 %v953_v34 }
 0x153   : > { %1971 = vmatprep.subr.mxu1 %v952_v35 }
 0x154   : > { %1972 = vmatpush3.msra.mxu1 %v952_v35 }
 0x155   : > { %1973 = vmatprep.subr.mxu1 %v951_v36 }
 0x156   : > { %1974 = vmatpush3.msra.mxu1 %v951_v36 }
 0x157   : > { %1975 = vmatprep.subr.mxu1 %v950_v37 }
 0x158   : > { %1976 = vmatpush3.msra.mxu1 %v950_v37 }
 0x159   : > { %1977 = vmatprep.subr.mxu1 %v949_v45 }
 0x15a   : > { %1978 = vmatpush3.msra.mxu1 %v949_v45  ;;  %v1295_v45 = vld [vmem:[#allocation9 + $0xd8] sm:$0xff] }
 0x15b   : > { %1979 = vmatprep.subr.mxu1 %v948_v46 }
 0x15c   : > { %1980 = vmatpush3.msra.mxu1 %v948_v46  ;;  %v1294_v46 = vld [vmem:[#allocation9 + $0xd0] sm:$0xff] }
 0x15d   : > { %1981 = vmatprep.subr.mxu1 %v947_v47 }
 0x15e   : > { %1982 = vmatpush3.msra.mxu1 %v947_v47  ;;  %v1293_v47 = vld [vmem:[#allocation9 + $0xc8] sm:$0xff] }
 0x15f   : > { %1983 = vmatprep.subr.mxu1 %v946_v48 }
 0x160   : > { %1984 = vmatpush3.msra.mxu1 %v946_v48  ;;  %v1292_v48 = vld [vmem:[#allocation9 + $0xc0] sm:$0xff] }
 0x161   : > { %1804 = vmatprep.subr.msk.mxu1 %vm668_vm0, %v1166_v23  ;;  %v1319_v23 = vld [vmem:[#allocation9 + $0x198] sm:$0xff] }
 0x201   : > { %v1933_v39 = vpop.f32.mrf.mxu1 }
 0x202   : > { %v843_v40 = vadd.f32 %v1933_v39, %v1797_v38 }
 0x203   : > { %v837_v41 = vpop.f32.mrf.mxu1 }
 0x204   : > { %v838_v42 = vadd.f32 %v1797_v38, %v837_v41  ;;  %v847_v44 = vmax.f32 %v843_v40, 0.0 }
 0x206   : > { %v846_v43 = vmax.f32 %v838_v42, 0.0 }
 0x208   : > { %1950 = vmatprep.mubr.msk.f32.mxu0 %vm764_vm2, %v846_v43  ;;  %v1298_v43 = vld [vmem:[#allocation9 + $0xf0] sm:$0xff] }
 0x209   : > { %1951 = vmatmul.mubr.msk.f32.vlgmr.msra.gmra.mxu0 %vm764_vm2, %v847_v44  ;;  %v1297_v44 = vld [vmem:[#allocation9 + $0xe8] sm:$0xff] }
 0x20a   : > { %1087 = vmatpush1.msra.mxu0 %v1084_v50  ;;  %1150 = vmatprep.mubr.f32.mxu0 %v2333_v28  ;;  %v1290_v50 = vld [vmem:[#allocation9 + $0xb0] sm:$0xff] }
 0x20b   : > { %1088 = vmatprep.subr.mxu0 %v1083_v51  ;;  %v1289_v51 = vld [vmem:[#allocation9 + $0xa8] sm:$0xff] }
 0x20c   : > { %1089 = vmatpush1.msra.mxu0 %v1082_v52  ;;  %v1288_v52 = vld [vmem:[#allocation9 + $0xa0] sm:$0xff] }
 0x20d   : > { %1090 = vmatprep.subr.mxu0 %v1081_v53  ;;  %v1287_v53 = vld [vmem:[#allocation9 + $0x98] sm:$0xff] }
 0x20e   : > { %1091 = vmatpush1.msra.mxu0 %v1080_v54  ;;  %v1286_v54 = vld [vmem:[#allocation9 + $0x90] sm:$0xff] }
 0x20f   : > { %1092 = vmatprep.subr.mxu0 %v1079_v55  ;;  %v1285_v55 = vld [vmem:[#allocation9 + $0x88] sm:$0xff] }
 0x210   : > { %1093 = vmatpush1.msra.mxu0 %v1078_v56  ;;  %v1284_v56 = vld [vmem:[#allocation9 + $0x80] sm:$0xff] }
 0x211   : > { %1094 = vmatprep.subr.mxu0 %v1077_v57  ;;  %v1283_v57 = vld [vmem:[#allocation9 + $0x78] sm:$0xff] }
 0x212   : > { %1095 = vmatpush1.msra.mxu0 %v1076_v58  ;;  %v1282_v58 = vld [vmem:[#allocation9 + $0x70] sm:$0xff] }
 0x213   : > { %1096 = vmatprep.subr.mxu0 %v1075_v59  ;;  %v1281_v59 = vld [vmem:[#allocation9 + $0x68] sm:$0xff] }
 0x214   : > { %1097 = vmatpush1.msra.mxu0 %v1074_v5  ;;  %v1273_v5 = vld [vmem:[#allocation9 + $0x28] sm:$0xff] }
 0x215   : > { %1098 = vmatprep.subr.mxu0 %v1073_v6  ;;  %v1272_v6 = vld [vmem:[#allocation9 + $0x20] sm:$0xff] }
 0x216   : > { %1099 = vmatpush1.msra.mxu0 %v1072_v7  ;;  %v1271_v7 = vld [vmem:[#allocation9 + $0x18] sm:$0xff] }
 0x217   : > { %1100 = vmatprep.subr.mxu0 %v1071_v8  ;;  %v1270_v8 = vld [vmem:[#allocation9 + $0x10] sm:$0xff] }
 0x218   : > { %1101 = vmatpush1.msra.mxu0 %v1070_v9  ;;  %v1269_v9 = vld [vmem:[#allocation9 + $0x8] sm:$0xff] }
 0x219   : > { %1102 = vmatprep.subr.mxu0 %v1069_v10  ;;  %v1268_v10 = vld [vmem:[#allocation9] sm:$0xff] }
 0x21a   : > { %1103 = vmatpush1.msra.mxu0 %v1068_v11  ;;  %v1331_v11 = vld [vmem:[#allocation9 + $0x1f8] sm:$0xff] }
 0x21b   : > { %1104 = vmatprep.subr.mxu0 %v1067_v12  ;;  %v1330_v12 = vld [vmem:[#allocation9 + $0x1f0] sm:$0xff] }
 0x21c   : > { %1105 = vmatpush1.msra.mxu0 %v1066_v13  ;;  %v1329_v13 = vld [vmem:[#allocation9 + $0x1e8] sm:$0xff] }
 0x21d   : > { %1106 = vmatprep.subr.mxu0 %v1065_v14  ;;  %v1328_v14 = vld [vmem:[#allocation9 + $0x1e0] sm:$0xff] }
 0x21e   : > { %1107 = vmatpush1.msra.mxu0 %v1064_v15  ;;  %v1327_v15 = vld [vmem:[#allocation9 + $0x1d8] sm:$0xff] }
 0x21f   : > { %1108 = vmatprep.subr.mxu0 %v1063_v16  ;;  %v1326_v16 = vld [vmem:[#allocation9 + $0x1d0] sm:$0xff] }
 0x220   : > { %1109 = vmatpush1.msra.mxu0 %v1062_v17  ;;  %v1325_v17 = vld [vmem:[#allocation9 + $0x1c8] sm:$0xff] }
 0x221   : > { %1110 = vmatprep.subr.mxu0 %v1061_v18  ;;  %v1324_v18 = vld [vmem:[#allocation9 + $0x1c0] sm:$0xff] }
 0x222   : > { %1111 = vmatpush1.msra.mxu0 %v1060_v19  ;;  %v1323_v19 = vld [vmem:[#allocation9 + $0x1b8] sm:$0xff] }
 0x223   : > { %1112 = vmatprep.subr.mxu0 %v1059_v20  ;;  %v1322_v20 = vld [vmem:[#allocation9 + $0x1b0] sm:$0xff] }
 0x224   : > { %1113 = vmatpush1.msra.mxu0 %v1058_v22  ;;  %v1320_v22 = vld [vmem:[#allocation9 + $0x1a0] sm:$0xff] }
 0x225   : > { %1114 = vmatprep.subr.mxu0 %v1057_v24  ;;  %v1318_v24 = vld [vmem:[#allocation9 + $0x190] sm:$0xff] }
 0x226   : > { %1115 = vmatpush1.msra.mxu0 %v1056_v25  ;;  %v1317_v25 = vld [vmem:[#allocation9 + $0x188] sm:$0xff] }
 0x227   : > { %1116 = vmatprep.subr.mxu0 %v1055_v26  ;;  %v1316_v26 = vld [vmem:[#allocation9 + $0x180] sm:$0xff] }
 0x228   : > { %1117 = vmatpush1.msra.mxu0 %v1054_v27  ;;  %v1315_v27 = vld [vmem:[#allocation9 + $0x178] sm:$0xff] }
 0x229   : > { %1344 = vmatprep.subr.mxu0 %v1299_v29  ;;  %v1313_v29 = vld [vmem:[#allocation9 + $0x168] sm:$0xff] }
 0x2c9   : > { %v1952_v61 = vpop.f32.mrf.mxu0 }
 0x2ca   : > { %v941_v62 = vadd.f32 %v1952_v61, %v1800_v60  ;;  %v1279_v61 = vld [vmem:[#allocation9 + $0x58] sm:$0xff] }
 0x2cb   : > { %v935_v63 = vpop.f32.mrf.mxu0 }
 0x2cc   : > { %v936_v0 = vadd.f32 %v1800_v60, %v935_v63  ;;  %v945_v4 = vmax.f32 %v941_v62, 0.0  ;;  %v1280_v60 = vld [vmem:[#allocation9 + $0x60] sm:$0xff]  ;;  %v1278_v62 = vld [vmem:[#allocation9 + $0x50] sm:$0xff]  ;;  %v1277_v63 = vld [vmem:[#allocation9 + $0x48] sm:$0xff] }
 0x2ce   : > { %v944_v3 = vmax.f32 %v936_v0, 0.0  ;;  %v1276_v0 = vld [vmem:[#allocation9 + $0x40] sm:$0xff] }
 0x2d0   : > { %1985 = vmatprep.mubr.f32.mxu1 %v944_v3  ;;  %v1275_v3 = vld [vmem:[#allocation9 + $0x38] sm:$0xff] }
 0x2d1   : > { %1986 = vmatmul.mubr.f32.vlgmr.msra.gmra.mxu1 %v945_v4  ;;  %v1274_v4 = vld [vmem:[#allocation9 + $0x30] sm:$0xff] }
 0x2d2   : > { %1805 = vmatpush1.msk.msra.mxu1 %vm668_vm0, %v1053_v21  ;;  %1235 = vmatprep.mubr.f32.mxu1 %v2333_v28  ;;  %v1321_v21 = vld [vmem:[#allocation9 + $0x1a8] sm:$0xff] }
 0x2d5   : > { %1806 = vmatmul.mubr.msk.f32.vlgmr.msra.gmra.mxu1 %vm661_vm1, %v2564_v1 }
 0x2d6   : > { %1241 = vmatprep.mubr.f32.mxu1 %v2333_v28  ;;  %v1314_v28 = vld [vmem:[#allocation9 + $0x170] sm:$0xff] }
 0x2d9   : > { %1807 = vmatmul.mubr.msk.f32.gmra.mxu1 %vm661_vm1, %v2566_v2  ;;  %v1296_v2 = vld [vmem:[#allocation9 + $0xe0] sm:$0xff] }
 0x391   : > { %v1987_v31 = vpop.f32.mrf.mxu1 }
 0x392   : > { %v1041_v32 = vadd.f32 %v1987_v31, %v1803_v30  ;;  %v1311_v31 = vld [vmem:[#allocation9 + $0x158] sm:$0xff] }
 0x393   : > { %v1035_v33 = vpop.f32.mrf.mxu1 }
 0x394   : > { %v1036_v34 = vadd.f32 %v1803_v30, %v1035_v33  ;;  %v1045_v35 = vmax.f32 %v1041_v32, 0.0  ;;  %v1312_v30 = vld [vmem:[#allocation9 + $0x160] sm:$0xff]  ;;  %v1310_v32 = vld [vmem:[#allocation9 + $0x150] sm:$0xff]  ;;  %v1309_v33 = vld [vmem:[#allocation9 + $0x148] sm:$0xff] }
 0x396   : > { %v1044_v36 = vmax.f32 %v1036_v34, 0.0  ;;  %v1308_v34 = vld [vmem:[#allocation9 + $0x140] sm:$0xff] }
 0x398   : > { %v1046_v37 = vmax.f32 %v1044_v36, %v1045_v35  ;;  %v1307_v35 = vld [vmem:[#allocation9 + $0x138] sm:$0xff]  ;;  %v1306_v36 = vld [vmem:[#allocation9 + $0x130] sm:$0xff] }
 0x39a   : > { %v1047_v1 = vrot.slane %v1046_v37, 4 }
 0x39c   : > { %v1048_v38 = vmax.f32 %v1046_v37, %v1047_v1  ;;  %v1305_v37 = vld [vmem:[#allocation9 + $0x128] sm:$0xff]  ;;  %v1304_v1 = vld [vmem:[#allocation9 + $0x120] sm:$0xff] }
 0x39e   : > { %v1049_v39 = vrot.slane %v1048_v38, 2 }
 0x3a0   : > { %v1050_v40 = vmax.f32 %v1048_v38, %v1049_v39  ;;  %v1303_v38 = vld [vmem:[#allocation9 + $0x118] sm:$0xff]  ;;  %v1302_v39 = vld [vmem:[#allocation9 + $0x110] sm:$0xff] }
 0x3a2   : > { %v1051_v41 = vrot.slane %v1050_v40, 1 }
 0x3a4   : > { %v1052_v42 = vmax.f32 %v1050_v40, %v1051_v41  ;;  %v1301_v40 = vld [vmem:[#allocation9 + $0x108] sm:$0xff]  ;;  %v1300_v41 = vld [vmem:[#allocation9 + $0x100] sm:$0xff] }
 0x3a6   : > { %1151 = vmatmul.mubr.f32.vlgmr.msra.gmra.mxu0 %v1052_v42  ;;  %v1456_v42 = vld [vmem:[#allocation10 + $0xf8] sm:$0xff] }
 0x3a7   : > { %1345 = vmatpush1.msra.mxu0 %v1298_v43  ;;  %v1440_v43 = vld [vmem:[#allocation10 + $0x78] sm:$0xff]  ;;  %1854 = vmatprep.subr.mxu1 %v1456_v42 }
 0x3a8   : > { %1346 = vmatprep.subr.mxu0 %v1297_v44  ;;  %v1455_v44 = vld [vmem:[#allocation10 + $0xf0] sm:$0xff]  ;;  %1855 = vmatpush3.msra.mxu1 %v1440_v43 }
 0x3a9   : > { %1347 = vmatpush1.msra.mxu0 %v1296_v2  ;;  %v1439_v2 = vld [vmem:[#allocation10 + $0x70] sm:$0xff]  ;;  %1856 = vmatprep.subr.mxu1 %v1455_v44 }
 0x3aa   : > { %1348 = vmatprep.subr.mxu0 %v1295_v45  ;;  %v1454_v45 = vld [vmem:[#allocation10 + $0xe8] sm:$0xff]  ;;  %1857 = vmatpush3.msra.mxu1 %v1439_v2 }
 0x3ab   : > { %1349 = vmatpush1.msra.mxu0 %v1294_v46  ;;  %v1438_v46 = vld [vmem:[#allocation10 + $0x68] sm:$0xff]  ;;  %1858 = vmatprep.subr.mxu1 %v1454_v45 }
 0x3ac   : > { %1350 = vmatprep.subr.mxu0 %v1293_v47  ;;  %v1453_v47 = vld [vmem:[#allocation10 + $0xe0] sm:$0xff]  ;;  %1859 = vmatpush3.msra.mxu1 %v1438_v46 }
 0x3ad   : > { %1351 = vmatpush1.msra.mxu0 %v1292_v48  ;;  %v1437_v48 = vld [vmem:[#allocation10 + $0x60] sm:$0xff]  ;;  %1860 = vmatprep.subr.mxu1 %v1453_v47 }
 0x3ae   : > { %1352 = vmatprep.subr.mxu0 %v1291_v49  ;;  %v1452_v49 = vld [vmem:[#allocation10 + $0xd8] sm:$0xff]  ;;  %1861 = vmatpush3.msra.mxu1 %v1437_v48 }
 0x3af   : > { %1353 = vmatpush1.msra.mxu0 %v1290_v50  ;;  %v1436_v50 = vld [vmem:[#allocation10 + $0x58] sm:$0xff]  ;;  %1862 = vmatprep.subr.mxu1 %v1452_v49 }
 0x3b0   : > { %1354 = vmatprep.subr.mxu0 %v1289_v51  ;;  %v1451_v51 = vld [vmem:[#allocation10 + $0xd0] sm:$0xff]  ;;  %1863 = vmatpush3.msra.mxu1 %v1436_v50 }
 0x3b1   : > { %1355 = vmatpush1.msra.mxu0 %v1288_v52  ;;  %v1435_v52 = vld [vmem:[#allocation10 + $0x50] sm:$0xff]  ;;  %1864 = vmatprep.subr.mxu1 %v1451_v51  ;;  %v1564_v51 = vld [vmem:[#allocation12 + $0x78] sm:$0xff] }
 0x3b2   : > { %1356 = vmatprep.subr.mxu0 %v1287_v53  ;;  %v1450_v53 = vld [vmem:[#allocation10 + $0xc8] sm:$0xff]  ;;  %1865 = vmatpush3.msra.mxu1 %v1435_v52  ;;  %v1563_v52 = vld [vmem:[#allocation12 + $0x70] sm:$0xff] }
 0x3b3   : > { %1357 = vmatpush1.msra.mxu0 %v1286_v54  ;;  %v1434_v54 = vld [vmem:[#allocation10 + $0x48] sm:$0xff]  ;;  %1866 = vmatprep.subr.mxu1 %v1450_v53 }
 0x3b4   : > { %1358 = vmatprep.subr.mxu0 %v1285_v55  ;;  %v1449_v55 = vld [vmem:[#allocation10 + $0xc0] sm:$0xff]  ;;  %1867 = vmatpush3.msra.mxu1 %v1434_v54  ;;  %v1562_v53 = vld [vmem:[#allocation12 + $0x68] sm:$0xff] }
 0x3b5   : > { %1359 = vmatpush1.msra.mxu0 %v1284_v56  ;;  %v1433_v56 = vld [vmem:[#allocation10 + $0x40] sm:$0xff]  ;;  %1868 = vmatprep.subr.mxu1 %v1449_v55  ;;  %v1560_v55 = vld [vmem:[#allocation12 + $0x58] sm:$0xff] }
 0x3b6   : > { %1360 = vmatprep.subr.mxu0 %v1283_v57  ;;  %v1448_v57 = vld [vmem:[#allocation10 + $0xb8] sm:$0xff]  ;;  %1869 = vmatpush3.msra.mxu1 %v1433_v56  ;;  %v1561_v54 = vld [vmem:[#allocation12 + $0x60] sm:$0xff] }
 0x3b7   : > { %1361 = vmatpush1.msra.mxu0 %v1282_v58  ;;  %v1432_v58 = vld [vmem:[#allocation10 + $0x38] sm:$0xff]  ;;  %1870 = vmatprep.subr.mxu1 %v1448_v57 }
 0x3b8   : > { %1362 = vmatprep.subr.mxu0 %v1281_v59  ;;  %v1447_v59 = vld [vmem:[#allocation10 + $0xb0] sm:$0xff]  ;;  %1871 = vmatpush3.msra.mxu1 %v1432_v58  ;;  %v1808_v58 = vld [vmem:[%s2631_s15] ss:$0 sm:$0xff] }
 0x3b9   : > { %1363 = vmatpush1.msra.mxu0 %v1280_v60  ;;  %v1431_v60 = vld [vmem:[#allocation10 + $0x30] sm:$0xff]  ;;  %1872 = vmatprep.subr.mxu1 %v1447_v59 }
 0x3ba   : > { %1364 = vmatprep.subr.mxu0 %v1279_v61  ;;  %v1446_v61 = vld [vmem:[#allocation10 + $0xa8] sm:$0xff]  ;;  %1873 = vmatpush3.msra.mxu1 %v1431_v60 }
 0x3bb   : > { %1365 = vmatpush1.msra.mxu0 %v1278_v62  ;;  %v1430_v62 = vld [vmem:[#allocation10 + $0x28] sm:$0xff]  ;;  %1874 = vmatprep.subr.mxu1 %v1446_v61 }
 0x3bc   : > { %1366 = vmatprep.subr.mxu0 %v1277_v63  ;;  %v1445_v63 = vld [vmem:[#allocation10 + $0xa0] sm:$0xff]  ;;  %1875 = vmatpush3.msra.mxu1 %v1430_v62 }
 0x3bd   : > { %1367 = vmatpush1.msra.mxu0 %v1276_v0  ;;  %v1429_v0 = vld [vmem:[#allocation10 + $0x20] sm:$0xff]  ;;  %1876 = vmatprep.subr.mxu1 %v1445_v63 }
 0x3be   : > { %1368 = vmatprep.subr.mxu0 %v1275_v3  ;;  %1877 = vmatpush3.msra.mxu1 %v1429_v0  ;;  %v1157_v3 = vlaneseq }
 0x3bf   : > { %1369 = vmatpush1.msra.mxu0 %v1274_v4  ;;  %v1237_v4 = vpop.f32.mrf.mxu1 }
 0x3c0   : > { %1370 = vmatprep.subr.mxu0 %v1273_v5  ;;  %v1158_v5 = vshrl.u32 %v1157_v3, 7  ;;  %v1559_v3 = vld [vmem:[#allocation12 + $0x50] sm:$0xff] }
 0x3c1   : > { %1371 = vmatpush1.msra.mxu0 %v1272_v6  ;;  %v1239_v6 = vpop.f32.mrf.mxu1 }
 0x3c2   : > { %1372 = vmatprep.subr.mxu0 %v1271_v7  ;;  %v1159_v7 = vsub.s32 0, %v1158_v5 }
 0x3c3   : > { %1373 = vmatpush1.msra.mxu0 %v1270_v8  ;;  %v1243_v8 = vpop.f32.mrf.mxu1 }
 0x3c4   : > { %1374 = vmatprep.subr.mxu0 %v1269_v9  ;;  %v1248_v9 = vld [vmem:[%s2627_s11] sm:$0x3] }
 0x3c5   : > { %1375 = vmatpush1.msra.mxu0 %v1268_v10  ;;  %v1256_v10 = vsub.s32 1, %v1158_v5  ;;  %v1557_v5 = vld [vmem:[#allocation12 + $0x40] sm:$0xff] }
 0x3c6   : > { %1376 = vmatprep.subr.mxu0 %v1331_v11 }
 0x3c7   : > { %1377 = vmatpush2.msra.mxu0 %v1330_v12 }
 0x3c8   : > { %1378 = vmatprep.subr.mxu0 %v1329_v13  ;;  %v1253_v13 = vrot.slane %v1248_v9, %v1159_v7 }
 0x3c9   : > { %1379 = vmatpush2.msra.mxu0 %v1328_v14 }
 0x3ca   : > { %1380 = vmatprep.subr.mxu0 %v1327_v15  ;;  %v1245_v15 = vpop.f32.mrf.mxu1 }
 0x3cb   : > { %1381 = vmatpush2.msra.mxu0 %v1326_v16 }
 0x3cc   : > { %1382 = vmatprep.subr.mxu0 %v1325_v17 }
 0x3cd   : > { %1383 = vmatpush2.msra.mxu0 %v1324_v18  ;;  %v1257_v18 = vrot.slane %v1248_v9, %v1256_v10  ;;  %v1553_v9 = vld [vmem:[#allocation12 + $0x20] sm:$0xff] }
 0x3ce   : > { %1384 = vmatprep.subr.mxu0 %v1323_v19 }
 0x3cf   : > { %1385 = vmatpush2.msra.mxu0 %v1322_v20 }
 0x3d0   : > { %1386 = vmatprep.subr.mxu0 %v1321_v21 }
 0x3d1   : > { %1387 = vmatpush2.msra.mxu0 %v1320_v22 }
 0x3d2   : > { %1388 = vmatprep.subr.mxu0 %v1319_v23 }
 0x3d3   : > { %1389 = vmatpush2.msra.mxu0 %v1318_v24 }
 0x3d4   : > { %1390 = vmatprep.subr.mxu0 %v1317_v25 }
 0x3d5   : > { %1391 = vmatpush2.msra.mxu0 %v1316_v26 }
 0x3d6   : > { %1392 = vmatprep.subr.mxu0 %v1315_v27 }
 0x3d7   : > { %1393 = vmatpush2.msra.mxu0 %v1314_v28 }
 0x3d8   : > { %1394 = vmatprep.subr.mxu0 %v1313_v29 }
 0x3d9   : > { %1395 = vmatpush2.msra.mxu0 %v1312_v30  ;;  %v1444_v30 = vld [vmem:[#allocation10 + $0x98] sm:$0xff] }
 0x3da   : > { %1396 = vmatprep.subr.mxu0 %v1311_v31  ;;  %1878 = vmatprep.subr.mxu1 %v1444_v30  ;;  %v1428_v31 = vld [vmem:[#allocation10 + $0x18] sm:$0xff] }
 0x3db   : > { %1397 = vmatpush2.msra.mxu0 %v1310_v32  ;;  %1879 = vmatpush3.msra.mxu1 %v1428_v31  ;;  %v1443_v32 = vld [vmem:[#allocation10 + $0x90] sm:$0xff] }
 0x3dc   : > { %1398 = vmatprep.subr.mxu0 %v1309_v33  ;;  %1880 = vmatprep.subr.mxu1 %v1443_v32  ;;  %v1427_v33 = vld [vmem:[#allocation10 + $0x10] sm:$0xff] }
 0x3dd   : > { %1399 = vmatpush2.msra.mxu0 %v1308_v34  ;;  %1881 = vmatpush3.msra.mxu1 %v1427_v33  ;;  %v1442_v34 = vld [vmem:[#allocation10 + $0x88] sm:$0xff] }
 0x3de   : > { %1400 = vmatprep.subr.mxu0 %v1307_v35  ;;  %1882 = vmatprep.subr.mxu1 %v1442_v34  ;;  %v1426_v35 = vld [vmem:[#allocation10 + $0x8] sm:$0xff] }
 0x3df   : > { %1401 = vmatpush2.msra.mxu0 %v1306_v36  ;;  %1883 = vmatpush3.msra.mxu1 %v1426_v35  ;;  %v1441_v36 = vld [vmem:[#allocation10 + $0x80] sm:$0xff] }
 0x3e0   : > { %1402 = vmatprep.subr.mxu0 %v1305_v37  ;;  %1884 = vmatprep.subr.mxu1 %v1441_v36  ;;  %v1425_v37 = vld [vmem:[#allocation10] sm:$0xff] }
 0x3e1   : > { %1403 = vmatpush2.msra.mxu0 %v1304_v1  ;;  %1885 = vmatpush3.msra.mxu1 %v1425_v37  ;;  %v1332_v1 = vld [vmem:[%s2629_s13] sm:$0x3] }
 0x3e2   : > { %1404 = vmatprep.subr.mxu0 %v1303_v38  ;;  %v1337_v38 = vrot.slane %v1332_v1, %v1159_v7  ;;  %1988 = vmatprep.subr.mxu1 %v1564_v51 }
 0x3e3   : > { %1405 = vmatpush2.msra.mxu0 %v1302_v39  ;;  %v1341_v39 = vrot.slane %v1332_v1, %v1256_v10  ;;  %v1552_v10 = vld [vmem:[#allocation12 + $0x18] sm:$0xff] }
 0x3e4   : > { %1406 = vmatprep.subr.mxu0 %v1301_v40 }
 0x3e5   : > { %1407 = vmatpush2.msra.mxu0 %v1300_v41 }
 0x466   : > { %v1152_v11 = vpop.f32.mrf.mxu0 }
 0x467   : > { %v1160_v12 = vrot.slane %v1152_v11, %v1159_v7  ;;  %v1551_v11 = vld [vmem:[#allocation12 + $0x10] sm:$0xff] }
 0x468   : > { %v1154_v14 = vpop.f32.mrf.mxu0 }
 0x469   : > { %v1238_v16 = vadd.f32 %v1237_v4, %v1160_v12  ;;  %v1164_v17 = vrot.slane %v1154_v14, %v1159_v7  ;;  %v1244_v22 = vadd.f32 %v1243_v8, %v1160_v12  ;;  %v1558_v4 = vld [vmem:[#allocation12 + $0x48] sm:$0xff]  ;;  %v1555_v7 = vld [vmem:[#allocation12 + $0x30] sm:$0xff] }
 0x46a   : > { %v1554_v8 = vld [vmem:[#allocation12 + $0x28] sm:$0xff] }
 0x46b   : > { %v1240_v19 = vadd.f32 %v1239_v6, %v1164_v17  ;;  %v1246_v20 = vadd.f32 %v1245_v15, %v1164_v17  ;;  %v1260_v21 = vadd.f32 %v1253_v13, %v1238_v16  ;;  %v1262_v27 = vadd.f32 %v1253_v13, %v1244_v22  ;;  %v1556_v6 = vld [vmem:[#allocation12 + $0x38] sm:$0xff]  ;;  %v1550_v12 = vld [vmem:[#allocation12 + $0x8] sm:$0xff]  ;;  %v1549_v13 = vld [vmem:[#allocation12] sm:$0xff] }
 0x46d   : > { %v1263_v23 = vadd.f32 %v1257_v18, %v1246_v20  ;;  %v1261_v24 = vadd.f32 %v1257_v18, %v1240_v19  ;;  %v1264_v26 = vmax.f32 %v1260_v21, 0.0  ;;  %v1266_v29 = vmax.f32 %v1262_v27, 0.0 }
 0x46f   : > { %v1265_v25 = vmax.f32 %v1261_v24, 0.0  ;;  %v1267_v28 = vmax.f32 %v1263_v23, 0.0 }
 0x471   : > { %1408 = vmatprep.mubr.f32.mxu0 %v1265_v25 }
 0x472   : > { %1409 = vmatmul.mubr.f32.vlgmr.msra.gmra.mxu0 %v1264_v26 }
 0x473   : > { %1414 = vmatprep.mubr.f32.mxu0 %v1267_v28 }
 0x476   : > { %1415 = vmatmul.mubr.f32.gmra.mxu0 %v1266_v29 }
 0x532   : > { %v1410_v40 = vpop.f32.mrf.mxu0 }
 0x533   : > { %v1411_v41 = vadd.f32 %v1410_v40, %v1337_v38 }
 0x534   : > { %v1412_v42 = vpop.f32.mrf.mxu0 }
 0x535   : > { %v1413_v43 = vadd.f32 %v1412_v42, %v1341_v39  ;;  %v1421_v45 = vmax.f32 %v1411_v41, 0.0 }
 0x536   : > { %v1416_v44 = vpop.f32.mrf.mxu0 }
 0x537   : > { %v1422_v2 = vmax.f32 %v1413_v43, 0.0  ;;  %v1417_v46 = vadd.f32 %v1416_v44, %v1337_v38 }
 0x538   : > { %v1418_v47 = vpop.f32.mrf.mxu0 }
 0x539   : > { %v1419_v48 = vadd.f32 %v1418_v47, %v1341_v39  ;;  %1528 = vmatprep.mubr.f32.mxu1 %v1422_v2  ;;  %v1423_v50 = vmax.f32 %v1417_v46, 0.0 }
 0x53a   : > { %1529 = vmatmul.mubr.f32.vlgmr.msra.gmra.mxu1 %v1421_v45 }
 0x53b   : > { %v1424_v49 = vmax.f32 %v1419_v48, 0.0  ;;  %1989 = vmatpush3.msra.mxu1 %v1564_v51 }
 0x53c   : > { %1990 = vmatprep.subr.mxu1 %v1563_v52 }
 0x53d   : > { %1533 = vmatprep.mubr.f32.mxu1 %v1424_v49  ;;  %1991 = vmatpush3.msra.mxu1 %v1563_v52 }
 0x53e   : > { %1534 = vmatmul.mubr.f32.gmra.mxu1 %v1423_v50  ;;  %1992 = vmatprep.subr.mxu1 %v1562_v53 }
 0x53f   : > { %1993 = vmatpush3.msra.mxu1 %v1562_v53 }
 0x540   : > { %1994 = vmatprep.subr.mxu1 %v1561_v54 }
 0x541   : > { %1995 = vmatpush3.msra.mxu1 %v1561_v54 }
 0x542   : > { %1996 = vmatprep.subr.mxu1 %v1560_v55 }
 0x543   : > { %1997 = vmatpush3.msra.mxu1 %v1560_v55 }
 0x544   : > { %1998 = vmatprep.subr.mxu1 %v1559_v3 }
 0x545   : > { %1999 = vmatpush3.msra.mxu1 %v1559_v3 }
 0x546   : > { %2000 = vmatprep.subr.mxu1 %v1558_v4 }
 0x547   : > { %2001 = vmatpush3.msra.mxu1 %v1558_v4 }
 0x548   : > { %2002 = vmatprep.subr.mxu1 %v1557_v5 }
 0x549   : > { %2003 = vmatpush3.msra.mxu1 %v1557_v5 }
 0x54a   : > { %2004 = vmatprep.subr.mxu1 %v1556_v6 }
 0x54b   : > { %2005 = vmatpush3.msra.mxu1 %v1556_v6 }
 0x54c   : > { %2006 = vmatprep.subr.mxu1 %v1555_v7 }
 0x54d   : > { %2007 = vmatpush3.msra.mxu1 %v1555_v7 }
 0x54e   : > { %2008 = vmatprep.subr.mxu1 %v1554_v8 }
 0x54f   : > { %2009 = vmatpush3.msra.mxu1 %v1554_v8 }
 0x550   : > { %2010 = vmatprep.subr.mxu1 %v1553_v9 }
 0x551   : > { %2011 = vmatpush3.msra.mxu1 %v1553_v9 }
 0x552   : > { %2012 = vmatprep.subr.mxu1 %v1552_v10 }
 0x553   : > { %2013 = vmatpush3.msra.mxu1 %v1552_v10 }
 0x554   : > { %2014 = vmatprep.subr.mxu1 %v1551_v11 }
 0x555   : > { %2015 = vmatpush3.msra.mxu1 %v1551_v11 }
 0x556   : > { %2016 = vmatprep.subr.mxu1 %v1550_v12 }
 0x557   : > { %2017 = vmatpush3.msra.mxu1 %v1550_v12 }
 0x558   : > { %2018 = vmatprep.subr.mxu1 %v1549_v13 }
 0x559   : > { %2019 = vmatpush3.msra.mxu1 %v1549_v13 }
 0x5fa   : > { %v1886_v56 = vpop.f32.mrf.mxu1 }
 0x5fc   : > { %v1887_v57 = vpop.f32.mrf.mxu1 }
 0x5fd   : > { %v1888_v59 = vadd.f32 %v1887_v57, %v1886_v56 }
 0x5fe   : > { %v1889_v60 = vpop.f32.mrf.mxu1 }
 0x5ff   : > { %v1531_v61 = vadd.f32 %v1888_v59, %v1808_v58 }
 0x600   : > { %v1890_v62 = vpop.f32.mrf.mxu1 }
 0x601   : > { %v1891_v63 = vadd.f32 %v1890_v62, %v1889_v60  ;;  %1539 = vmax.xlane.f32.xlu0 %v1531_v61 }
 0x603   : > { %v1536_v0 = vadd.f32 %v1891_v63, %v1808_v58 }
 0x605   : > { %1541 = vmax.xlane.f32.xlu0 %v1536_v0 }
 0x68a   : > { %v1540_v14 = vpop.xlane.xlu0 %1539 }
 0x68b   : > { %v1543_v15 = vsub.f32 %v1531_v61, %v1540_v14 }
 0x68d   : > { %v1545_v16 = vmul.f32 1.442695, %v1543_v15 }
 0x68e   : > { %v1542_v17 = vpop.xlane.xlu0 %1541 }
 0x68f   : > { %2108 = vpow2.f32 %v1545_v16  ;;  %v1544_v18 = vsub.f32 %v1536_v0, %v1542_v17 }
 0x691   : > { %v1547_v19 = vmul.f32 1.442695, %v1544_v18 }
 0x693   : > { %2110 = vpow2.f32 %v1547_v19 }
 0x69c   : > { %v2109_v20 = vpop.eup %2108 }
 0x69d   : > { %2020 = vmatprep.mubr.f32.mxu1 %v2109_v20 }
 0x6a0   : > { %v2111_v21 = vpop.eup %2110 }
 0x6a1   : > { %2021 = vmatmul.mubr.f32.vlgmr.msra.gmra.mxu1 %v2111_v21 }
 0x761   : > { %v2022_v22 = vpop.f32.mrf.mxu1 }
 0x762   : > { %2112 = vrcp.f32 %v2022_v22 }
 0x763   : > { %v1631_v23 = vpop.f32.mrf.mxu1 }
 0x764   : > { %2114 = vrcp.f32 %v1631_v23 }
 0x76f   : > { %v2113_v24 = vpop.eup %2112 }
 0x770   : > { %v1643_v25 = vmul.f32 %v2113_v24, %v2111_v21 }
 0x771   : > { %v2115_v26 = vpop.eup %2114 }
 0x772   : > { %1645 = vst [vmem:[%s650_s18 + $0x8] sm:$0xff] %v1643_v25  ;;  %v1641_v27 = vmul.f32 %v2115_v26, %v2109_v20 }
 0x774   : > { %1644 = vst [vmem:[%s650_s18] sm:$0xff] %v1641_v27 }
 0x775 PF: > { %s31_s24 = sadd.s32 1, %s2320_s24  }
 0x776   : > { %p28_p2 = scmp.ge.s32.totalorder %s31_s24, 4  }
 0x778   :  { %30 = sbr.rel (!%p28_p2) target bundleno = 8 (0x8), region = 147 }
 0x77d   :  { %1667 = vsyncpa [#allocation3], 1 }
 0x77e   :  { %1669 = vsyncpa [#allocation3 + $0x1], 1 }
 0x77f   :  { %1670 = vsyncpa [#allocation5], 1 }
 0x780   :  { %1671 = vsyncpa [#allocation8], 1 }
 0x781   :  { %1672 = vsyncpa [#allocation11], 1 }

</bundles_post_ra>
